<compile_context>
chip_gen: v7x
topology: tpu7x:2x2x1
jax: 0.10.0
libtpu: 0.0.40
codegen_flags: <defaults>
</compile_context>

<pallas_src>
import jax
import jax.numpy as jnp
from jax import lax
from jax.experimental import pallas as pl
from jax.experimental.pallas import tpu as pltpu


# ----------------------------------------------------------------------------
# Fused kernel: one batch element per grid step.
#   xp_ref  : (1, Ho, Wo, 4*Cin)  space-to-depth'ed input (dh, dw, cin on lane)
#   w1_ref  : (4*Cin, Cin), b1_ref: (1, Cin)     -- 2x2/s2 conv as matmul
#   w2_ref  : (Cin, Cout),  b2_ref: (1, Cout)    -- 1x1 conv as matmul
#   w3_ref  : (9, Cout),    b3_ref: (1, Cout)    -- depthwise 3x3 taps
#   out_ref : (1, Cout, Ho*Wo)    NCHW-ordered, lane-dense flattened spatial
#   ypad_ref: VMEM scratch (Ho+2, Wo+2, Cout)    zero-bordered intermediate
# ----------------------------------------------------------------------------
def _down_fused_kernel(xp_ref, w1_ref, b1_ref, w2_ref, b2_ref, w3_ref, b3_ref,
                       out_ref, ypad_ref):
    _, Ho, Wo, C4 = xp_ref.shape
    Cout = out_ref.shape[1]

    # ---- conv1 (2x2, stride 2) as matmul + LeakyReLU; conv2 (1x1) as matmul ----
    xm = xp_ref[0].reshape(Ho * Wo, C4)                              # (N, 4*Cin)
    h1 = jnp.dot(xm, w1_ref[...], preferred_element_type=jnp.float32)
    h1 = h1 + b1_ref[...]
    h1 = jnp.where(h1 >= 0, h1, 0.01 * h1)                           # LeakyReLU
    h2 = jnp.dot(h1, w2_ref[...], preferred_element_type=jnp.float32)
    h2 = h2 + b2_ref[...]                                            # (N, Cout)

    # ---- depthwise 3x3 (padding=1): intermediate + halo live in VMEM scratch ----
    # Zero only the 1-px border; the interior is fully overwritten right after.
    zrow = jnp.zeros((1, Wo + 2, Cout), jnp.float32)
    zcol = jnp.zeros((Ho + 2, 1, Cout), jnp.float32)
    ypad_ref[0:1, :, :] = zrow
    ypad_ref[Ho + 1:Ho + 2, :, :] = zrow
    ypad_ref[:, 0:1, :] = zcol
    ypad_ref[:, Wo + 1:Wo + 2, :] = zcol
    ypad_ref[1:Ho + 1, 1:Wo + 1, :] = h2.reshape(Ho, Wo, Cout)

    w3 = w3_ref[...]                                                 # (9, Cout)
    acc = ypad_ref[0:Ho, 0:Wo, :] * w3[0]                            # first tap
    for kh in range(3):
        for kw in range(3):
            if kh == 0 and kw == 0:
                continue
            acc = acc + ypad_ref[kh:kh + Ho, kw:kw + Wo, :] * w3[kh * 3 + kw]
    acc = acc + b3_ref[...]
    acc = jnp.where(acc >= 0, acc, 0.01 * acc)                       # LeakyReLU

    # ---- NHWC -> NCHW inside the kernel; lane-dense store (last dim = Ho*Wo) ----
    out_ref[0] = acc.reshape(Ho * Wo, Cout).T.astype(out_ref.dtype)


def down_forward_pallas(x_nchw, params):
    """x_nchw: (B, Cin, H, W) float32. Returns (B, Cout, H//2, W//2)."""
    w1, b1, w2, b2, w3, b3 = params            # PyTorch-shaped weights
    B, Cin, H, W = x_nchw.shape
    Cout = w2.shape[0]
    Ho, Wo = H // 2, W // 2

    # ---- glue: one fused space-to-depth transpose on the (small) input ----
    x_ev = x_nchw[:, :, :2 * Ho, :2 * Wo]                                # floor like PyTorch
    xp = x_ev.reshape(B, Cin, Ho, 2, Wo, 2).transpose(0, 2, 4, 3, 5, 1)  # (B,Ho,Wo,2,2,Cin)
    xp = xp.reshape(B, Ho, Wo, 4 * Cin)                                  # lane = (dh,dw,cin)

    # weight repacking (tiny, done once per call by XLA)
    w1_mat = jnp.transpose(w1, (2, 3, 1, 0)).reshape(4 * Cin, Cin)       # (dh,dw,cin)->cout
    w2_mat = jnp.transpose(w2[:, :, 0, 0], (1, 0))                       # (Cin, Cout)
    w3_mat = jnp.transpose(w3[:, 0], (1, 2, 0)).reshape(9, Cout)         # (kh*3+kw, Cout)
    b1_r = b1.reshape(1, Cin)
    b2_r = b2.reshape(1, Cout)
    b3_r = b3.reshape(1, Cout)

    out_flat = pl.pallas_call(
        _down_fused_kernel,
        out_shape=jax.ShapeDtypeStruct((B, Cout, Ho * Wo), jnp.float32),
        grid=(B,),
        in_specs=[
            pl.BlockSpec((1, Ho, Wo, 4 * Cin), lambda b: (b, 0, 0, 0)),
            pl.BlockSpec((4 * Cin, Cin), lambda b: (0, 0)),
            pl.BlockSpec((1, Cin), lambda b: (0, 0)),
            pl.BlockSpec((Cin, Cout), lambda b: (0, 0)),
            pl.BlockSpec((1, Cout), lambda b: (0, 0)),
            pl.BlockSpec((9, Cout), lambda b: (0, 0)),
            pl.BlockSpec((1, Cout), lambda b: (0, 0)),
        ],
        out_specs=pl.BlockSpec((1, Cout, Ho * Wo), lambda b: (b, 0, 0)),
        scratch_shapes=[pltpu.VMEM((Ho + 2, Wo + 2, Cout), jnp.float32)],
        compiler_params=pltpu.CompilerParams(dimension_semantics=("parallel",)),
    )(xp, w1_mat, b1_r, w2_mat, b2_r, w3_mat, b3_r)

    # free (metadata-only) reshape: flat spatial -> (Ho, Wo), already NCHW order
    return out_flat.reshape(B, Cout, Ho, Wo)


# ----------------------------------------------------------------------------
# Pure-JAX reference (mirrors the PyTorch module exactly, NCHW) for validation
# ----------------------------------------------------------------------------
def down_forward_ref(x, params):
    w1, b1, w2, b2, w3, b3 = params
    Cout = w2.shape[0]
    dn = ("NCHW", "OIHW", "NCHW")
    y = lax.conv_general_dilated(x, w1, (2, 2), "VALID", dimension_numbers=dn)
    y = y + b1[None, :, None, None]
    y = jnp.where(y >= 0, y, 0.01 * y)
    y = lax.conv_general_dilated(y, w2, (1, 1), "VALID", dimension_numbers=dn)
    y = y + b2[None, :, None, None]
    y = lax.conv_general_dilated(y, w3, (1, 1), ((1, 1), (1, 1)),
                                 dimension_numbers=dn, feature_group_count=Cout)
    y = y + b3[None, :, None, None]
    y = jnp.where(y >= 0, y, 0.01 * y)
    return y


if __name__ == "__main__":
    B, Cin, Cout, H, W = 2, 4, 8, 16, 16

    key = jax.random.PRNGKey(0)
    kx, k1, k2, k3, k4, k5, k6 = jax.random.split(key, 7)

    x = jax.random.normal(kx, (B, Cin, H, W), jnp.float32)

    # Deterministic synthetic parameters (PyTorch weight shapes).
    w1 = jax.random.normal(k1, (Cin, Cin, 2, 2), jnp.float32) * 0.2
    b1 = jax.random.normal(k2, (Cin,), jnp.float32) * 0.1
    w2 = jax.random.normal(k3, (Cout, Cin, 1, 1), jnp.float32) * 0.2
    b2 = jax.random.normal(k4, (Cout,), jnp.float32) * 0.1
    w3 = jax.random.normal(k5, (Cout, 1, 3, 3), jnp.float32) * 0.2
    b3 = jax.random.normal(k6, (Cout,), jnp.float32) * 0.1
    params = (w1, b1, w2, b2, w3, b3)

    out = jax.block_until_ready(down_forward_pallas(x, params))
    ref = jax.block_until_ready(down_forward_ref(x, params))

    assert out.shape == (B, Cout, H // 2, W // 2), out.shape
    assert jnp.allclose(out, ref, rtol=1e-4, atol=1e-4), float(jnp.max(jnp.abs(out - ref)))

    print("KERNEL_OK")
</pallas_src>

<mosaic_0001>
module attributes {stable_mosaic.version = 11 : i64} {
  func.func @_down_fused_kernel(%arg0: i32, %arg1: memref<1x8x8x16xf32, #tpu.memory_space<vmem>>, %arg2: memref<16x4xf32, #tpu.memory_space<vmem>>, %arg3: memref<1x4xf32, #tpu.memory_space<vmem>>, %arg4: memref<4x8xf32, #tpu.memory_space<vmem>>, %arg5: memref<1x8xf32, #tpu.memory_space<vmem>>, %arg6: memref<9x8xf32, #tpu.memory_space<vmem>>, %arg7: memref<1x8xf32, #tpu.memory_space<vmem>>, %arg8: memref<1x8x64xf32, #tpu.memory_space<vmem>>, %arg9: memref<10x10x8xf32, #tpu.memory_space<vmem>>) attributes {dimension_semantics = [#tpu.dimension_semantics<parallel>], iteration_bounds = array<i64: 2>, scalar_prefetch = 0 : i64, scratch_operands = 1 : i64, tpu.core_type = #tpu.core_type<tc>, window_params = [{transform_indices = @transform_0, window_bounds = array<i64: 1, 8, 8, 16>}, {pipeline_mode = #tpu.pipeline_mode<synchronous>, transform_indices = @transform_1, window_bounds = array<i64: 16, 4>}, {pipeline_mode = #tpu.pipeline_mode<synchronous>, transform_indices = @transform_2, window_bounds = array<i64: 1, 4>}, {pipeline_mode = #tpu.pipeline_mode<synchronous>, transform_indices = @transform_3, window_bounds = array<i64: 4, 8>}, {pipeline_mode = #tpu.pipeline_mode<synchronous>, transform_indices = @transform_4, window_bounds = array<i64: 1, 8>}, {pipeline_mode = #tpu.pipeline_mode<synchronous>, transform_indices = @transform_5, window_bounds = array<i64: 9, 8>}, {pipeline_mode = #tpu.pipeline_mode<synchronous>, transform_indices = @transform_6, window_bounds = array<i64: 1, 8>}, {transform_indices = @transform_7, window_bounds = array<i64: 1, 8, 64>}]} {
    %c0 = arith.constant 0 : index
    %c0_0 = arith.constant 0 : index
    %c0_1 = arith.constant 0 : index
    %c0_2 = arith.constant 0 : index
    %0 = vector.load %arg1[%c0, %c0_0, %c0_1, %c0_2] : memref<1x8x8x16xf32, #tpu.memory_space<vmem>>, vector<1x8x8x16xf32>
    %1 = vector.shape_cast %0 : vector<1x8x8x16xf32> to vector<8x8x16xf32>
    %2 = vector.shape_cast %1 : vector<8x8x16xf32> to vector<64x16xf32>
    %c0_3 = arith.constant 0 : index
    %c0_4 = arith.constant 0 : index
    %3 = vector.load %arg2[%c0_3, %c0_4] : memref<16x4xf32, #tpu.memory_space<vmem>>, vector<16x4xf32>
    %cst = arith.constant dense<0.000000e+00> : vector<64x4xf32>
    %4 = tpu.matmul %2, %3, %cst {dimension_numbers = #tpu.dot_dimension_numbers<[1], [0], [0], [1], [0, 0, 1, 1], [], []>} : vector<64x16xf32>, vector<16x4xf32>, vector<64x4xf32> -> vector<64x4xf32>
    %c0_5 = arith.constant 0 : index
    %c0_6 = arith.constant 0 : index
    %5 = vector.load %arg3[%c0_5, %c0_6] : memref<1x4xf32, #tpu.memory_space<vmem>>, vector<1x4xf32>
    %6 = vector.broadcast %5 : vector<1x4xf32> to vector<64x4xf32>
    %7 = arith.addf %4, %6 : vector<64x4xf32>
    %cst_7 = arith.constant 0.000000e+00 : f32
    %8 = vector.broadcast %cst_7 : f32 to vector<64x4xf32>
    %9 = arith.cmpf oge, %7, %8 : vector<64x4xf32>
    %cst_8 = arith.constant 0.00999999977 : f32
    %10 = vector.broadcast %cst_8 : f32 to vector<64x4xf32>
    %11 = arith.mulf %10, %7 : vector<64x4xf32>
    %12 = arith.select %9, %7, %11 : vector<64x4xi1>, vector<64x4xf32>
    %c0_9 = arith.constant 0 : index
    %c0_10 = arith.constant 0 : index
    %13 = vector.load %arg4[%c0_9, %c0_10] : memref<4x8xf32, #tpu.memory_space<vmem>>, vector<4x8xf32>
    %cst_11 = arith.constant dense<0.000000e+00> : vector<64x8xf32>
    %14 = tpu.matmul %12, %13, %cst_11 {dimension_numbers = #tpu.dot_dimension_numbers<[1], [0], [0], [1], [0, 0, 1, 1], [], []>} : vector<64x4xf32>, vector<4x8xf32>, vector<64x8xf32> -> vector<64x8xf32>
    %c0_12 = arith.constant 0 : index
    %c0_13 = arith.constant 0 : index
    %15 = vector.load %arg5[%c0_12, %c0_13] : memref<1x8xf32, #tpu.memory_space<vmem>>, vector<1x8xf32>
    %16 = vector.broadcast %15 : vector<1x8xf32> to vector<64x8xf32>
    %17 = arith.addf %14, %16 : vector<64x8xf32>
    %cst_14 = arith.constant 0.000000e+00 : f32
    %18 = vector.broadcast %cst_14 : f32 to vector<1x10x8xf32>
    %cst_15 = arith.constant 0.000000e+00 : f32
    %19 = vector.broadcast %cst_15 : f32 to vector<10x1x8xf32>
    %c0_16 = arith.constant 0 : index
    %c0_17 = arith.constant 0 : index
    %c0_18 = arith.constant 0 : index
    %20 = vector.load %arg9[%c0_16, %c0_17, %c0_18] : memref<10x10x8xf32, #tpu.memory_space<vmem>>, vector<1x10x8xf32>
    tpu.vector_store %arg9[%c0_16, %c0_17, %c0_18], %18 {strides = array<i32>} : memref<10x10x8xf32, #tpu.memory_space<vmem>>, vector<1x10x8xf32>,
    %c9 = arith.constant 9 : index
    %c0_19 = arith.constant 0 : index
    %c0_20 = arith.constant 0 : index
    %21 = vector.load %arg9[%c9, %c0_19, %c0_20] : memref<10x10x8xf32, #tpu.memory_space<vmem>>, vector<1x10x8xf32>
    tpu.vector_store %arg9[%c9, %c0_19, %c0_20], %18 {strides = array<i32>} : memref<10x10x8xf32, #tpu.memory_space<vmem>>, vector<1x10x8xf32>,
    %c0_21 = arith.constant 0 : index
    %c0_22 = arith.constant 0 : index
    %c0_23 = arith.constant 0 : index
    %22 = vector.load %arg9[%c0_21, %c0_22, %c0_23] : memref<10x10x8xf32, #tpu.memory_space<vmem>>, vector<10x1x8xf32>
    tpu.vector_store %arg9[%c0_21, %c0_22, %c0_23], %19 {strides = array<i32>} : memref<10x10x8xf32, #tpu.memory_space<vmem>>, vector<10x1x8xf32>,
    %c0_24 = arith.constant 0 : index
    %c9_25 = arith.constant 9 : index
    %c0_26 = arith.constant 0 : index
    %23 = vector.load %arg9[%c0_24, %c9_25, %c0_26] : memref<10x10x8xf32, #tpu.memory_space<vmem>>, vector<10x1x8xf32>
    tpu.vector_store %arg9[%c0_24, %c9_25, %c0_26], %19 {strides = array<i32>} : memref<10x10x8xf32, #tpu.memory_space<vmem>>, vector<10x1x8xf32>,
    %24 = vector.shape_cast %17 : vector<64x8xf32> to vector<8x8x8xf32>
    %c1 = arith.constant 1 : index
    %c1_27 = arith.constant 1 : index
    %c0_28 = arith.constant 0 : index
    %25 = vector.load %arg9[%c1, %c1_27, %c0_28] : memref<10x10x8xf32, #tpu.memory_space<vmem>>, vector<8x8x8xf32>
    tpu.vector_store %arg9[%c1, %c1_27, %c0_28], %24 {strides = array<i32>} : memref<10x10x8xf32, #tpu.memory_space<vmem>>, vector<8x8x8xf32>,
    %c0_29 = arith.constant 0 : index
    %c0_30 = arith.constant 0 : index
    %26 = vector.load %arg6[%c0_29, %c0_30] : memref<9x8xf32, #tpu.memory_space<vmem>>, vector<9x8xf32>
    %c0_31 = arith.constant 0 : index
    %c0_32 = arith.constant 0 : index
    %c0_33 = arith.constant 0 : index
    %27 = vector.load %arg9[%c0_31, %c0_32, %c0_33] : memref<10x10x8xf32, #tpu.memory_space<vmem>>, vector<8x8x8xf32>
    %28 = vector.extract_strided_slice %26 {offsets = [0, 0], sizes = [1, 8], strides = [1, 1]} : vector<9x8xf32> to vector<1x8xf32>
    %29 = vector.shape_cast %28 : vector<1x8xf32> to vector<8xf32>
    %30 = vector.shape_cast %29 : vector<8xf32> to vector<1x1x8xf32>
    %31 = vector.broadcast %30 : vector<1x1x8xf32> to vector<8x8x8xf32>
    %32 = arith.mulf %27, %31 : vector<8x8x8xf32>
    %c0_34 = arith.constant 0 : index
    %c1_35 = arith.constant 1 : index
    %c0_36 = arith.constant 0 : index
    %33 = vector.load %arg9[%c0_34, %c1_35, %c0_36] : memref<10x10x8xf32, #tpu.memory_space<vmem>>, vector<8x8x8xf32>
    %34 = vector.extract_strided_slice %26 {offsets = [1, 0], sizes = [1, 8], strides = [1, 1]} : vector<9x8xf32> to vector<1x8xf32>
    %35 = vector.shape_cast %34 : vector<1x8xf32> to vector<8xf32>
    %36 = vector.shape_cast %35 : vector<8xf32> to vector<1x1x8xf32>
    %37 = vector.broadcast %36 : vector<1x1x8xf32> to vector<8x8x8xf32>
    %38 = arith.mulf %33, %37 : vector<8x8x8xf32>
    %39 = arith.addf %32, %38 : vector<8x8x8xf32>
    %c0_37 = arith.constant 0 : index
    %c2 = arith.constant 2 : index
    %c0_38 = arith.constant 0 : index
    %40 = vector.load %arg9[%c0_37, %c2, %c0_38] : memref<10x10x8xf32, #tpu.memory_space<vmem>>, vector<8x8x8xf32>
    %41 = vector.extract_strided_slice %26 {offsets = [2, 0], sizes = [1, 8], strides = [1, 1]} : vector<9x8xf32> to vector<1x8xf32>
    %42 = vector.shape_cast %41 : vector<1x8xf32> to vector<8xf32>
    %43 = vector.shape_cast %42 : vector<8xf32> to vector<1x1x8xf32>
    %44 = vector.broadcast %43 : vector<1x1x8xf32> to vector<8x8x8xf32>
    %45 = arith.mulf %40, %44 : vector<8x8x8xf32>
    %46 = arith.addf %39, %45 : vector<8x8x8xf32>
    %c1_39 = arith.constant 1 : index
    %c0_40 = arith.constant 0 : index
    %c0_41 = arith.constant 0 : index
    %47 = vector.load %arg9[%c1_39, %c0_40, %c0_41] : memref<10x10x8xf32, #tpu.memory_space<vmem>>, vector<8x8x8xf32>
    %48 = vector.extract_strided_slice %26 {offsets = [3, 0], sizes = [1, 8], strides = [1, 1]} : vector<9x8xf32> to vector<1x8xf32>
    %49 = vector.shape_cast %48 : vector<1x8xf32> to vector<8xf32>
    %50 = vector.shape_cast %49 : vector<8xf32> to vector<1x1x8xf32>
    %51 = vector.broadcast %50 : vector<1x1x8xf32> to vector<8x8x8xf32>
    %52 = arith.mulf %47, %51 : vector<8x8x8xf32>
    %53 = arith.addf %46, %52 : vector<8x8x8xf32>
    %c1_42 = arith.constant 1 : index
    %c1_43 = arith.constant 1 : index
    %c0_44 = arith.constant 0 : index
    %54 = vector.load %arg9[%c1_42, %c1_43, %c0_44] : memref<10x10x8xf32, #tpu.memory_space<vmem>>, vector<8x8x8xf32>
    %55 = vector.extract_strided_slice %26 {offsets = [4, 0], sizes = [1, 8], strides = [1, 1]} : vector<9x8xf32> to vector<1x8xf32>
    %56 = vector.shape_cast %55 : vector<1x8xf32> to vector<8xf32>
    %57 = vector.shape_cast %56 : vector<8xf32> to vector<1x1x8xf32>
    %58 = vector.broadcast %57 : vector<1x1x8xf32> to vector<8x8x8xf32>
    %59 = arith.mulf %54, %58 : vector<8x8x8xf32>
    %60 = arith.addf %53, %59 : vector<8x8x8xf32>
    %c1_45 = arith.constant 1 : index
    %c2_46 = arith.constant 2 : index
    %c0_47 = arith.constant 0 : index
    %61 = vector.load %arg9[%c1_45, %c2_46, %c0_47] : memref<10x10x8xf32, #tpu.memory_space<vmem>>, vector<8x8x8xf32>
    %62 = vector.extract_strided_slice %26 {offsets = [5, 0], sizes = [1, 8], strides = [1, 1]} : vector<9x8xf32> to vector<1x8xf32>
    %63 = vector.shape_cast %62 : vector<1x8xf32> to vector<8xf32>
    %64 = vector.shape_cast %63 : vector<8xf32> to vector<1x1x8xf32>
    %65 = vector.broadcast %64 : vector<1x1x8xf32> to vector<8x8x8xf32>
    %66 = arith.mulf %61, %65 : vector<8x8x8xf32>
    %67 = arith.addf %60, %66 : vector<8x8x8xf32>
    %c2_48 = arith.constant 2 : index
    %c0_49 = arith.constant 0 : index
    %c0_50 = arith.constant 0 : index
    %68 = vector.load %arg9[%c2_48, %c0_49, %c0_50] : memref<10x10x8xf32, #tpu.memory_space<vmem>>, vector<8x8x8xf32>
    %69 = vector.extract_strided_slice %26 {offsets = [6, 0], sizes = [1, 8], strides = [1, 1]} : vector<9x8xf32> to vector<1x8xf32>
    %70 = vector.shape_cast %69 : vector<1x8xf32> to vector<8xf32>
    %71 = vector.shape_cast %70 : vector<8xf32> to vector<1x1x8xf32>
    %72 = vector.broadcast %71 : vector<1x1x8xf32> to vector<8x8x8xf32>
    %73 = arith.mulf %68, %72 : vector<8x8x8xf32>
    %74 = arith.addf %67, %73 : vector<8x8x8xf32>
    %c2_51 = arith.constant 2 : index
    %c1_52 = arith.constant 1 : index
    %c0_53 = arith.constant 0 : index
    %75 = vector.load %arg9[%c2_51, %c1_52, %c0_53] : memref<10x10x8xf32, #tpu.memory_space<vmem>>, vector<8x8x8xf32>
    %76 = vector.extract_strided_slice %26 {offsets = [7, 0], sizes = [1, 8], strides = [1, 1]} : vector<9x8xf32> to vector<1x8xf32>
    %77 = vector.shape_cast %76 : vector<1x8xf32> to vector<8xf32>
    %78 = vector.shape_cast %77 : vector<8xf32> to vector<1x1x8xf32>
    %79 = vector.broadcast %78 : vector<1x1x8xf32> to vector<8x8x8xf32>
    %80 = arith.mulf %75, %79 : vector<8x8x8xf32>
    %81 = arith.addf %74, %80 : vector<8x8x8xf32>
    %c2_54 = arith.constant 2 : index
    %c2_55 = arith.constant 2 : index
    %c0_56 = arith.constant 0 : index
    %82 = vector.load %arg9[%c2_54, %c2_55, %c0_56] : memref<10x10x8xf32, #tpu.memory_space<vmem>>, vector<8x8x8xf32>
    %83 = vector.extract_strided_slice %26 {offsets = [8, 0], sizes = [1, 8], strides = [1, 1]} : vector<9x8xf32> to vector<1x8xf32>
    %84 = vector.shape_cast %83 : vector<1x8xf32> to vector<8xf32>
    %85 = vector.shape_cast %84 : vector<8xf32> to vector<1x1x8xf32>
    %86 = vector.broadcast %85 : vector<1x1x8xf32> to vector<8x8x8xf32>
    %87 = arith.mulf %82, %86 : vector<8x8x8xf32>
    %88 = arith.addf %81, %87 : vector<8x8x8xf32>
    %c0_57 = arith.constant 0 : index
    %c0_58 = arith.constant 0 : index
    %89 = vector.load %arg7[%c0_57, %c0_58] : memref<1x8xf32, #tpu.memory_space<vmem>>, vector<1x8xf32>
    %90 = vector.shape_cast %89 : vector<1x8xf32> to vector<1x1x8xf32>
    %91 = vector.broadcast %90 : vector<1x1x8xf32> to vector<8x8x8xf32>
    %92 = arith.addf %88, %91 : vector<8x8x8xf32>
    %cst_59 = arith.constant 0.000000e+00 : f32
    %93 = vector.broadcast %cst_59 : f32 to vector<8x8x8xf32>
    %94 = arith.cmpf oge, %92, %93 : vector<8x8x8xf32>
    %cst_60 = arith.constant 0.00999999977 : f32
    %95 = vector.broadcast %cst_60 : f32 to vector<8x8x8xf32>
    %96 = arith.mulf %95, %92 : vector<8x8x8xf32>
    %97 = arith.select %94, %92, %96 : vector<8x8x8xi1>, vector<8x8x8xf32>
    %98 = vector.shape_cast %97 : vector<8x8x8xf32> to vector<64x8xf32>
    %99 = tpu.transpose %98, [1, 0] : vector<64x8xf32> -> vector<8x64xf32>
    %c0_61 = arith.constant 0 : index
    %c0_62 = arith.constant 0 : index
    %c0_63 = arith.constant 0 : index
    %100 = vector.load %arg8[%c0_61, %c0_62, %c0_63] : memref<1x8x64xf32, #tpu.memory_space<vmem>>, vector<1x8x64xf32>
    %101 = vector.shape_cast %100 : vector<1x8x64xf32> to vector<8x64xf32>
    %102 = vector.shape_cast %99 : vector<8x64xf32> to vector<1x8x64xf32>
    tpu.vector_store %arg8[%c0_61, %c0_62, %c0_63], %102 {strides = array<i32>} : memref<1x8x64xf32, #tpu.memory_space<vmem>>, vector<1x8x64xf32>,
    return
  }
  func.func @transform_0(%arg0: i32) -> (i32, i32, i32, i32) {
    %c0_i32 = arith.constant 0 : i32
    %c0_i32_0 = arith.constant 0 : i32
    %c0_i32_1 = arith.constant 0 : i32
    %c0_i32_2 = arith.constant 0 : i32
    return %arg0, %c0_i32, %c0_i32_0, %c0_i32_1 : i32, i32, i32, i32
  }
  func.func @transform_1(%arg0: i32) -> (i32, i32) {
    %c0_i32 = arith.constant 0 : i32
    %c0_i32_0 = arith.constant 0 : i32
    %c0_i32_1 = arith.constant 0 : i32
    return %c0_i32, %c0_i32_0 : i32, i32
  }
  func.func @transform_2(%arg0: i32) -> (i32, i32) {
    %c0_i32 = arith.constant 0 : i32
    %c0_i32_0 = arith.constant 0 : i32
    %c0_i32_1 = arith.constant 0 : i32
    return %c0_i32, %c0_i32_0 : i32, i32
  }
  func.func @transform_3(%arg0: i32) -> (i32, i32) {
    %c0_i32 = arith.constant 0 : i32
    %c0_i32_0 = arith.constant 0 : i32
    %c0_i32_1 = arith.constant 0 : i32
    return %c0_i32, %c0_i32_0 : i32, i32
  }
  func.func @transform_4(%arg0: i32) -> (i32, i32) {
    %c0_i32 = arith.constant 0 : i32
    %c0_i32_0 = arith.constant 0 : i32
    %c0_i32_1 = arith.constant 0 : i32
    return %c0_i32, %c0_i32_0 : i32, i32
  }
  func.func @transform_5(%arg0: i32) -> (i32, i32) {
    %c0_i32 = arith.constant 0 : i32
    %c0_i32_0 = arith.constant 0 : i32
    %c0_i32_1 = arith.constant 0 : i32
    return %c0_i32, %c0_i32_0 : i32, i32
  }
  func.func @transform_6(%arg0: i32) -> (i32, i32) {
    %c0_i32 = arith.constant 0 : i32
    %c0_i32_0 = arith.constant 0 : i32
    %c0_i32_1 = arith.constant 0 : i32
    return %c0_i32, %c0_i32_0 : i32, i32
  }
  func.func @transform_7(%arg0: i32) -> (i32, i32, i32) {
    %c0_i32 = arith.constant 0 : i32
    %c0_i32_0 = arith.constant 0 : i32
    %c0_i32_1 = arith.constant 0 : i32
    return %arg0, %c0_i32, %c0_i32_0 : i32, i32, i32
  }
}

</mosaic_0001>

<bundles_post_ra>
// kernel: tpu_custom_call.1
= control target key start
LH: loop header
LB: loop body
LE: loop exit
PB: predicated region body
PF: predicated region fallthrough
CT: control target
= control target key end

     0   :  { %12 = vsyncpa [#allocation4], 0  ;;  %s1662_s0 = inlined_call_operand.hbm [shape: f32[2,8,8,16], index: 0, kind: input, shape index: {}]   ;;  %s1663_s1 = inlined_call_operand.vmem [shape: f32[16,4], index: 1, kind: input, shape index: {}]   ;;  %s1664_s2 = inlined_call_operand.vmem [shape: f32[1,4], index: 2, kind: input, shape index: {}]   ;;  %s1665_s3 = inlined_call_operand.vmem [shape: f32[4,8], index: 3, kind: input, shape index: {}]   ;;  %s1666_s4 = inlined_call_operand.vmem [shape: f32[1,8], index: 4, kind: input, shape index: {}]   ;;  %s1667_s5 = inlined_call_operand.vmem [shape: f32[9,8], index: 5, kind: input, shape index: {}]   ;;  %s1668_s6 = inlined_call_operand.vmem [shape: f32[1,8], index: 6, kind: input, shape index: {}]   ;;  %s1669_s7 = inlined_call_operand.hbm [shape: f32[2,8,64], index: 7, kind: output, shape index: {}]  }
   0x1   :  { %14 = vsyncpa [#allocation4 + $0x1], 0 }
   0x2   :  { %15 = vsyncpa [#allocation5], 0 }
   0x3   :  { %17 = vsyncpa [#allocation5 + $0x1], 0  ;;  %s1331_s24 = smov 0   ;;  %s1333_s25 = smov 0  }
   0x4   :  { %s1335_s26 = smov 0   ;;  %s1337_s27 = smov 0  }
   0x5 LB: > { %s1352_s28 = sadd.s32 4294967295, %s1284_s27   ;;  %s1051_s29 = sadd.s32 4294967294, %s1284_s27   ;;  %s1284_s27 = sphi %s1337_s27, %s1682_s27   ;;  %s1280_s26 = sphi %s1335_s26, %s1681_s26   ;;  %s1276_s25 = sphi %s1333_s25, %s1680_s25   ;;  %s1272_s24 = sphi %s1331_s24, %s1679_s24  }
   0x6   : > { %s1356_s30 = sadd.s32 1, %s1284_s27   ;;  %s30_s8 = sadd.s32 1, %s1280_s26 }
   0x7   : > { %s27_s9 = ssub.s32 %s1284_s27, %s1356_s30  ;;  %p37_p0 = scmp.ne.s32.totalorder %s1280_s26, %s1276_s25 }
   0x8   : > { %p28_p1 = scmp.eq.s32.totalorder %s27_s9, 0  ;;  %p38_p2 = scmp.eq.s32.totalorder %s1284_s27, 0 }
   0x9   : > { %p43_p3 = scmp.ne.s32.totalorder %s1276_s25, %s1272_s24  ;;  %p44_p4 = scmp.eq.s32.totalorder %s1352_s28, 0 }
   0xa   : > { %s1368_s10 = scalar_select %p28_p1, %s1280_s26, %s30_s8  }
   0xb   : > { %p1370_p5 = por %p38_p2, %p37_p0  ;;  %p1374_p6 = por %p44_p4, %p43_p3 }
   0xc   : > { %p193_p7 = scmp.eq.s32.totalorder %s1352_s28, 1  ;;  %p199_p8 = scmp.eq.s32.totalorder %s1051_s29, 1 }
   0xd   : > { %p1151_p10 = scmp.lt.s32.totalorder %s1284_s27, 2  ;;  %s237_s15 = sand.u32 1, %s1280_s26  }
   0xe   : > { %p1381_p11 = por %p193_p7, %p37_p0  ;;  %p1385_p12 = por %p199_p8, %p43_p3 }
   0xf   : > { %s1085_s16 = sshll.u32 %s1284_s27, 10  ;;  %s1054_s17 = sshll.u32 %s237_s15, 6 }
  0x10   : > { %s1673_s13 = scalar_select %p1381_p11, 1, 0 }
  0x11   : > { %s1674_s14 = scalar_select %p1385_p12, 1, 0 }
  0x12   : > { %s1394_s20 = scalar_lea.hbm %s1662_s0, %s1085_s16  ;;  %s241_s21 = scalar_lea.vmem [#allocation3], %s1054_s17 }
  0x13   : > { %s248_s22 = sshll.u32 %s241_s21, 4  ;;  %p1398_p13 = pnand %p1151_p10, %p1370_p5  ;;  %s1402_s22 = int_to_ptr.vmem [resolvable:$true] %s248_s22 }
  0x14   : > { %s1404_s29 = scalar_lea.sflag [#allocation4], %s237_s15  ;;  %s1188_s8 = scalar_lea.hbm %s1394_s20, 1024 }
  0x15   : > { %p1189_p0 = scmp.ne.s32.totalorder %s1394_s20, %s1188_s8  ;;  %p1190_p1 = pneg %p1398_p13 }
  0x16   : > { %s1193_s16 = scalar_lea.hbm %s1662_s0, 2048  ;;  %p1194_p4 = scmp.lt.u32.totalorder %s1394_s20, %s1662_s0 }
  0x17   : > { %p1191_p2 = pnand %p1190_p1, %p1189_p0  ;;  %p1195_p5 = scmp.lt.u32.totalorder %s1193_s16, %s1188_s8 }
  0x18   : > { %p1197_p8 = scmp.lt.u32.totalorder %s1188_s8, %s1394_s20 }
  0x19   : > { %p1192_p3 = pneg %p1191_p2  ;;  %p1196_p7 = por %p1195_p5, %p1194_p4 }
  0x1b   : > { %p1198_p10 = por %p1197_p8, %p1196_p7 }
  0x1d   : > { %p1199_p9 = pnand %p1198_p10, %p1192_p3 }
  0x1f   : > { %1202 = shalt.err (!%p1199_p9)
}
  0x20   : > { %s1203_s15 = scalar_lea.vmem %s1402_s22, 1024  ;;  %s1286_s19 = smov [#allocation3]  }
  0x21   : > { %p1204_p0 = scmp.ne.s32.totalorder %s1402_s22, %s1203_s15  ;;  %s1208_s21 = sshll.u32 %s1286_s19, 4  ;;  %s1209_s21 = int_to_ptr.vmem [resolvable:$false] %s1208_s21 }
  0x22   : > { %s1210_s9 = scalar_lea.vmem %s1209_s21, 2048  ;;  %p1211_p11 = scmp.lt.s32.totalorder %s1402_s22, %s1209_s21 }
  0x23   : > { %p1206_p2 = pnand %p1204_p0, %p1190_p1  ;;  %p1212_p4 = scmp.lt.s32.totalorder %s1210_s9, %s1203_s15 }
  0x25   : > { %p1207_p12 = pneg %p1206_p2  ;;  %p1213_p5 = por %p1212_p4, %p1211_p11 }
  0x27   : > { %p1214_p7 = pnand %p1213_p5, %p1207_p12 }
  0x29   : > { %1217 = shalt.err (!%p1214_p7)
}
  0x2a   : > { %s1287_s8 = smov 128   ;;  %s1288_s11 = smov 8  }
  0x2b   : > { %1146 = dma.hbm_to_vmem [thread:$0]  (!%p1398_p13), %s1394_s20, 1024, %s1402_s22, %s1404_s29, %s1287_s8, %s1287_s8, %s1288_s11  }
  0x2c   : > { %p1057_p9 = scmp.ge.s32.totalorder %s1284_s27, 1  ;;  %p256_p1 = scmp.lt.s32.totalorder %s1284_s27, 3 }
  0x2e   : > { %p257_p3 = pnand %p1057_p9, %p256_p1 }
  0x2f   : > { %s1435_s16 = sand.u32 (!%p257_p3), 1, %s1276_s25  }
  0x30   : > { %260 = sbr.rel (%p257_p3) target bundleno = 672 (0x2a0), region = 48  ;;  %s1058_s17 = sshll.u32 (!%p257_p3), %s1435_s16, 6 }
  0x31   : > { %s263_s18 = scalar_lea.sflag (!%p257_p3), [#allocation4], %s1435_s16  ;;  %s266_s15 = scalar_lea.vmem (!%p257_p3), [#allocation3], %s1058_s17 }
  0x37   : > { %1263 = dma.done.wait (%p1374_p6), %s263_s18, 1024  }
  0x38   : > { %1265 = vsyncadd (%p1374_p6), %s263_s18, 4294966272  ;;  %vm314_vm0 = vcmask 130048   ;;  %v305_v0 = vld [vmem:[%s1663_s1] sm:$0xff]  ;;  %v306_v1 = vld [vmem:[%s1663_s1 + $0x8] sm:$0xff]  ;;  %vm501_vm1 = vcmask 1043456   ;;  %vm476_vm4 = vcmask 31744   ;;  %v657_v46 = vlaneseq }
  0x39   : > { %v297_v2 = vld [vmem:[%s266_s15] sm:$0xff]  ;;  %v1135_v3 = vpack.c.bf16 %v306_v1, %v305_v0  ;;  %v298_v4 = vld [vmem:[%s266_s15 + $0x8] sm:$0xff]  ;;  %v299_v5 = vld [vmem:[%s266_s15 + $0x10] sm:$0xff]  ;;  %vm610_vm11 = vcmask 64512   ;;  %v1289_v45 = vmov 0.0   ;;  %vm612_vm12 = vcmask 58368  }
  0x3a   : > { %1109 = vmatprep.mubr.msk.f32.mxu0 %vm314_vm0, %v297_v2  ;;  %v300_v6 = vld [vmem:[%s266_s15 + $0x18] sm:$0xff]  ;;  %v301_v7 = vld [vmem:[%s266_s15 + $0x20] sm:$0xff]  ;;  %v302_v8 = vld [vmem:[%s266_s15 + $0x28] sm:$0xff]  ;;  %611 = vst.msk [vmem:[#allocation2] sm:$0xff] %vm610_vm11, %v1289_v45  ;;  %vm617_vm13 = vcmask 57344   ;;  %v658_v47 = vshrl.u32 %v657_v46, 7 }
  0x3b   : > { %1136 = vmatprep.subr.bf16.mxu0 %v1135_v3  ;;  %v303_v9 = vld [vmem:[%s266_s15 + $0x30] sm:$0xff]  ;;  %v304_v10 = vld [vmem:[%s266_s15 + $0x38] sm:$0xff]  ;;  %v468_v11 = vld [vmem:[%s1665_s3] sm:$0xf]  ;;  %615 = vst.msk [vmem:[#allocation2 + $0x90] sm:$0xff] %vm610_vm11, %v1289_v45  ;;  %s1059_s29 = sshll.u32 %s1435_s16, 3 }
  0x3c   : > { %1138 = vmatpush3.bf16.msra.mxu0 %v1135_v3  ;;  %1121 = vmatprep.subr.msk.mxu1 %vm501_vm1, %v468_v11  ;;  %v1060_v12 = vld [vmem:[%s1664_s2] ss:$0 sm:$0xff]  ;;  %613 = vst.msk [vmem:[#allocation2 + $0x8] sm:$0x3] %vm612_vm12, %v1289_v45  ;;  %616 = vst.msk [vmem:[#allocation2 + $0x98] sm:$0x3] %vm612_vm12, %v1289_v45 }
  0x3d   : > { %1122 = vmatpush3.msk.msra.mxu1 %vm501_vm1, %v468_v11  ;;  %618 = vst.msk [vmem:[#allocation2] sm:$0x1] %vm617_vm13, %v1289_v45  ;;  %619 = vst.msk [vmem:[#allocation2 + $0x10] sm:$0x1] %vm617_vm13, %v1289_v45  ;;  %v659_v48 = vsub.s32 0, %v658_v47  ;;  %v679_v49 = vsub.s32 1, %v658_v47 }
  0x3e   : > { %620 = vst.msk [vmem:[#allocation2 + $0x20] sm:$0x1] %vm617_vm13, %v1289_v45  ;;  %629 = vst.msk [vmem:[#allocation2 + $0x19] sm:$0x1] %vm617_vm13, %v1289_v45  ;;  %v647_v50 = vld [vmem:[%s1667_s5] sm:$0xff]  ;;  %v707_v54 = vsub.s32 2, %v658_v47 }
  0x3f   : > { %1110 = vmatmul.mubr.msk.f32.vlgmr.msra.gmra.mrb[0].mxu0 %vm314_vm0, %v298_v4  ;;  %630 = vst.msk [vmem:[#allocation2 + $0x29] sm:$0x1] %vm617_vm13, %v1289_v45  ;;  %621 = vst.msk [vmem:[#allocation2 + $0x30] sm:$0x1] %vm617_vm13, %v1289_v45  ;;  %v1069_v51 = vld [vmem:[%s1666_s4] ss:$0 sm:$0xff]  ;;  %v1499_v52 = vrot.slane %v647_v50, %v659_v48  ;;  %v1501_v53 = vrot.slane %v647_v50, %v679_v49 }
  0x40   : > { %1112 = vmatprep.mubr.msk.f32.mxu0 %vm314_vm0, %v299_v5  ;;  %622 = vst.msk [vmem:[#allocation2 + $0x40] sm:$0x1] %vm617_vm13, %v1289_v45  ;;  %623 = vst.msk [vmem:[#allocation2 + $0x50] sm:$0x1] %vm617_vm13, %v1289_v45  ;;  %v1505_v63 = vrot.slane %v647_v50, %v707_v54  ;;  %v735_v2 = vsub.s32 3, %v658_v47  ;;  %v820_v3 = vsub.s32 6, %v658_v47 }
  0x41   : > { %624 = vst.msk [vmem:[#allocation2 + $0x60] sm:$0x1] %vm617_vm13, %v1289_v45  ;;  %625 = vst.msk [vmem:[#allocation2 + $0x70] sm:$0x1] %vm617_vm13, %v1289_v45  ;;  %s1082_s12 = sshll.u32 %s1352_s28, 7  ;;  %s296_s19 = scalar_lea.vmem [#allocation6], %s1059_s29 }
  0x42   : > { %626 = vst.msk [vmem:[#allocation2 + $0x80] sm:$0x1] %vm617_vm13, %v1289_v45  ;;  %631 = vst.msk [vmem:[#allocation2 + $0x39] sm:$0x1] %vm617_vm13, %v1289_v45  ;;  %s981_s21 = sshll.u32 %s296_s19, 4  ;;  %s1618_s11 = scalar_lea.hbm %s1669_s7, %s1082_s12  ;;  %s1620_s21 = int_to_ptr.vmem [resolvable:$true] %s981_s21 }
  0x43   : > { %1113 = vmatmul.mubr.msk.f32.gmra.mrb[2].mxu0 %vm314_vm0, %v300_v6  ;;  %632 = vst.msk [vmem:[#allocation2 + $0x49] sm:$0x1] %vm617_vm13, %v1289_v45  ;;  %633 = vst.msk [vmem:[#allocation2 + $0x59] sm:$0x1] %vm617_vm13, %v1289_v45  ;;  %v669_v56 = vld [vmem:[#allocation2 + $0x1] sm:$0xff]  ;;  %v848_v6 = vsub.s32 7, %v658_v47 }
  0x44   : > { %1115 = vmatprep.mubr.msk.f32.mxu0 %vm314_vm0, %v301_v7  ;;  %634 = vst.msk [vmem:[#allocation2 + $0x69] sm:$0x1] %vm617_vm13, %v1289_v45  ;;  %635 = vst.msk [vmem:[#allocation2 + $0x79] sm:$0x1] %vm617_vm13, %v1289_v45  ;;  %v649_v55 = vld [vmem:[#allocation2] sm:$0xff]  ;;  %v681_v62 = vmul.f32 %v1501_v53, %v669_v56  ;;  %s968_s17 = scalar_lea.sflag [#allocation5], %s1435_s16 }
  0x45   : > { %636 = vst.msk [vmem:[#allocation2 + $0x89] sm:$0x1] %vm617_vm13, %v1289_v45  ;;  %627 = vst.msk [vmem:[#allocation2 + $0x90] sm:$0x1] %vm617_vm13, %v1289_v45  ;;  %v661_v61 = vmul.f32 %v1499_v52, %v649_v55  ;;  %s1218_s18 = scalar_lea.vmem %s1620_s21, 128  ;;  %p1676_p11 = scmp.ne.s32.totalorder %s1673_s13, 0 }
  0x46   : > { %628 = vst.msk [vmem:[#allocation2 + $0x9] sm:$0x1] %vm617_vm13, %v1289_v45  ;;  %637 = vst.msk [vmem:[#allocation2 + $0x99] sm:$0x1] %vm617_vm13, %v1289_v45  ;;  %p1219_p6 = scmp.ne.s32.totalorder %s1620_s21, %s1218_s18  ;;  %s1290_s28 = smov [#allocation6]  }
  0x47   : > { %1116 = vmatmul.mubr.msk.f32.gmra.mrb[4].mxu0 %vm314_vm0, %v302_v8  ;;  %v689_v8 = vadd.f32 %v681_v62, %v661_v61  ;;  %s1222_s15 = sshll.u32 %s1290_s28, 4  ;;  %s1223_s15 = int_to_ptr.vmem [resolvable:$false] %s1222_s15 }
  0x48   : > { %1118 = vmatprep.mubr.msk.f32.mxu0 %vm314_vm0, %v303_v9  ;;  %p1220_p12 = pnand %p1219_p6, %p1676_p11  ;;  %s1224_s20 = scalar_lea.vmem %s1223_s15, 256 }
  0x49   : > { %p1225_p8 = scmp.lt.s32.totalorder %s1620_s21, %s1223_s15  ;;  %p1226_p10 = scmp.lt.s32.totalorder %s1224_s20, %s1218_s18 }
  0x4a   : > { %p1221_p13 = pneg %p1220_p12 }
  0x4b   : > { %1119 = vmatmul.mubr.msk.f32.gmra.mrb[6].mxu0 %vm314_vm0, %v304_v10  ;;  %v763_v10 = vsub.s32 4, %v658_v47  ;;  %p1227_p0 = por %p1226_p10, %p1225_p8 }
  0x4d   : > { %v697_v0 = vld [vmem:[#allocation2 + $0x2] sm:$0xff]  ;;  %p1228_p2 = pnand %p1227_p0, %p1221_p13 }
  0x4e   : > { %v709_v9 = vmul.f32 %v1505_v63, %v697_v0 }
 0x112   : > { %v1111_v13 = vpop.f32.mrb[0].mxu0 }
 0x113   : > { %v411_v14 = vadd.f32 %v1111_v13, %v1060_v12  ;;  %v405_v15 = vpop.f32.mrb[1].mxu0  ;;  %v791_v13 = vsub.s32 5, %v658_v47 }
 0x114   : > { %v406_v16 = vadd.f32 %v1060_v12, %v405_v15 }
 0x115   : > { %v453_v17 = vmul.f32 0.01, %v411_v14  ;;  %vm445_vm2 = vcmp.ge.f32.partialorder %v411_v14, 0.0 }
 0x116   : > { %v1114_v18 = vpop.f32.mrb[2].mxu0  ;;  %vm444_vm3 = vcmp.ge.f32.partialorder %v406_v16, 0.0  ;;  %v452_v19 = vmul.f32 0.01, %v406_v16 }
 0x117   : > { %v421_v20 = vadd.f32 %v1114_v18, %v1060_v12  ;;  %v415_v21 = vpop.f32.mrb[3].mxu0  ;;  %v461_v25 = vsel %vm445_vm2, %v411_v14, %v453_v17  ;;  %v1514_v14 = vrot.slane %v647_v50, %v820_v3  ;;  %v1519_v17 = vld [vmem:[%s1667_s5 + $0x8] ss:$0 sm:$0xff]  ;;  %v1521_v18 = vrot.slane %v647_v50, %v848_v6 }
 0x118   : > { %v416_v22 = vadd.f32 %v1060_v12, %v415_v21  ;;  %v460_v23 = vsel %vm444_vm3, %v406_v16, %v452_v19  ;;  %v1523_v21 = vrot.slane %v647_v50, %v763_v10 }
 0x119   : > { %vm447_vm5 = vcmp.ge.f32.partialorder %v421_v20, 0.0  ;;  %v455_v24 = vmul.f32 0.01, %v421_v20  ;;  %1123 = vmatprep.mubr.msk.f32.mxu1 %vm476_vm4, %v460_v23 }
 0x11a   : > { %vm446_vm6 = vcmp.ge.f32.partialorder %v416_v22, 0.0  ;;  %v454_v26 = vmul.f32 0.01, %v416_v22  ;;  %v1117_v27 = vpop.f32.mrb[4].mxu0  ;;  %1124 = vmatmul.mubr.msk.f32.vlgmr.msra.gmra.mrb[0].mxu1 %vm476_vm4, %v461_v25 }
 0x11b   : > { %v431_v28 = vadd.f32 %v1117_v27, %v1060_v12  ;;  %v425_v29 = vpop.f32.mrb[5].mxu0  ;;  %v463_v30 = vsel %vm447_vm5, %v421_v20, %v455_v24  ;;  %v717_v20 = vadd.f32 %v709_v9, %v689_v8 }
 0x11c   : > { %v426_v31 = vadd.f32 %v1060_v12, %v425_v29  ;;  %v462_v32 = vsel %vm446_vm6, %v416_v22, %v454_v26  ;;  %vm965_vm6 = vcmask 523264  }
 0x11d   : > { %vm449_vm7 = vcmp.ge.f32.partialorder %v431_v28, 0.0  ;;  %v457_v33 = vmul.f32 0.01, %v431_v28  ;;  %1126 = vmatprep.mubr.msk.f32.mxu1 %vm476_vm4, %v462_v32 }
 0x11e   : > { %vm448_vm8 = vcmp.ge.f32.partialorder %v426_v31, 0.0  ;;  %v456_v34 = vmul.f32 0.01, %v426_v31  ;;  %v1120_v35 = vpop.f32.mrb[6].mxu0  ;;  %1127 = vmatmul.mubr.msk.f32.gmra.mrb[2].mxu1 %vm476_vm4, %v463_v30  ;;  %v1528_v30 = vrot.slane %v647_v50, %v791_v13 }
 0x11f   : > { %v441_v36 = vadd.f32 %v1120_v35, %v1060_v12  ;;  %v435_v37 = vpop.f32.mrb[7].mxu0  ;;  %v465_v38 = vsel %vm449_vm7, %v431_v28, %v457_v33 }
 0x120   : > { %v436_v39 = vadd.f32 %v1060_v12, %v435_v37  ;;  %v464_v40 = vsel %vm448_vm8, %v426_v31, %v456_v34  ;;  %v1512_v12 = vrot.slane %v647_v50, %v735_v2 }
 0x121   : > { %vm451_vm9 = vcmp.ge.f32.partialorder %v441_v36, 0.0  ;;  %v459_v41 = vmul.f32 0.01, %v441_v36  ;;  %1129 = vmatprep.mubr.msk.f32.mxu1 %vm476_vm4, %v464_v40 }
 0x122   : > { %vm450_vm10 = vcmp.ge.f32.partialorder %v436_v39, 0.0  ;;  %v458_v42 = vmul.f32 0.01, %v436_v39  ;;  %1130 = vmatmul.mubr.msk.f32.gmra.mrb[4].mxu1 %vm476_vm4, %v465_v38 }
 0x123   : > { %v467_v43 = vsel %vm451_vm9, %v441_v36, %v459_v41 }
 0x124   : > { %v466_v44 = vsel %vm450_vm10, %v436_v39, %v458_v42 }
 0x125   : > { %1132 = vmatprep.mubr.msk.f32.mxu1 %vm476_vm4, %v466_v44 }
 0x126   : > { %1133 = vmatmul.mubr.msk.f32.gmra.mrb[6].mxu1 %vm476_vm4, %v467_v43 }
 0x1ed   : > { %v1125_v57 = vpop.f32.mrb[0].mxu1 }
 0x1ee   : > { %v577_v58 = vadd.f32 %v1125_v57, %v1069_v51  ;;  %v571_v59 = vpop.f32.mrb[1].mxu1 }
 0x1ef   : > { %v572_v60 = vadd.f32 %v1069_v51, %v571_v59 }
 0x1f0   : > { %640 = vst.msk [vmem:[#allocation2 + $0x21] sm:$0xff] %vm610_vm11, %v577_v58 }
 0x1f1   : > { %639 = vst.msk [vmem:[#allocation2 + $0x11] sm:$0xff] %vm610_vm11, %v572_v60  ;;  %v1128_v1 = vpop.f32.mrb[2].mxu1 }
 0x1f2   : > { %v587_v4 = vadd.f32 %v1128_v1, %v1069_v51  ;;  %v581_v5 = vpop.f32.mrb[3].mxu1 }
 0x1f3   : > { %v582_v7 = vadd.f32 %v1069_v51, %v581_v5 }
 0x1f4   : > { %642 = vst.msk [vmem:[#allocation2 + $0x41] sm:$0xff] %vm610_vm11, %v587_v4 }
 0x1f5   : > { %641 = vst.msk [vmem:[#allocation2 + $0x31] sm:$0xff] %vm610_vm11, %v582_v7  ;;  %v1131_v11 = vpop.f32.mrb[4].mxu1 }
 0x1f6   : > { %v597_v15 = vadd.f32 %v1131_v11, %v1069_v51  ;;  %v591_v16 = vpop.f32.mrb[5].mxu1 }
 0x1f7   : > { %v592_v19 = vadd.f32 %v1069_v51, %v591_v16  ;;  %v810_v22 = vld [vmem:[#allocation2 + $0x20] sm:$0xff] }
 0x1f8   : > { %v838_v23 = vld [vmem:[#allocation2 + $0x21] sm:$0xff]  ;;  %644 = vst.msk [vmem:[#allocation2 + $0x61] sm:$0xff] %vm610_vm11, %v597_v15  ;;  %v725_v25 = vld [vmem:[#allocation2 + $0x10] sm:$0xff]  ;;  %v822_v31 = vmul.f32 %v1514_v14, %v810_v22  ;;  %v663_v41 = vmul.f32 %v810_v22, %v1499_v52  ;;  %v738_v44 = vmul.f32 %v810_v22, %v1512_v12 }
 0x1f9   : > { %v866_v24 = vld [vmem:[#allocation2 + $0x22] sm:$0xff]  ;;  %v753_v26 = vld [vmem:[#allocation2 + $0x11] sm:$0xff]  ;;  %643 = vst.msk [vmem:[#allocation2 + $0x51] sm:$0xff] %vm610_vm11, %v592_v19  ;;  %v1134_v27 = vpop.f32.mrb[6].mxu1  ;;  %v737_v28 = vmul.f32 %v1512_v12, %v725_v25  ;;  %v662_v32 = vmul.f32 %v725_v25, %v1499_v52  ;;  %v850_v35 = vmul.f32 %v1521_v18, %v838_v23  ;;  %v683_v47 = vmul.f32 %v838_v23, %v1501_v53 }
 0x1fa   : > { %v781_v29 = vld [vmem:[#allocation2 + $0x12] sm:$0xff]  ;;  %v607_v33 = vadd.f32 %v1134_v27, %v1069_v51  ;;  %v601_v34 = vpop.f32.mrb[7].mxu1  ;;  %v878_v36 = vmul.f32 %v1519_v17, %v866_v24  ;;  %v682_v37 = vmul.f32 %v753_v26, %v1501_v53  ;;  %v765_v40 = vmul.f32 %v1523_v21, %v753_v26 }
 0x1fb   : > { %v602_v38 = vadd.f32 %v1069_v51, %v601_v34  ;;  %v745_v39 = vadd.f32 %v737_v28, %v717_v20  ;;  %v710_v43 = vmul.f32 %v781_v29, %v1505_v63  ;;  %v812_v48 = vld [vmem:[#allocation2 + $0x40] sm:$0xff]  ;;  %v793_v50 = vmul.f32 %v1528_v30, %v781_v29 }
 0x1fc   : > { %646 = vst.msk [vmem:[#allocation2 + $0x81] sm:$0xff] %vm610_vm11, %v607_v33  ;;  %v690_v42 = vadd.f32 %v682_v37, %v662_v32  ;;  %v811_v45 = vld [vmem:[#allocation2 + $0x30] sm:$0xff]  ;;  %v766_v51 = vmul.f32 %v838_v23, %v1523_v21  ;;  %v794_v54 = vmul.f32 %v866_v24, %v1528_v30  ;;  %v691_v57 = vadd.f32 %v683_v47, %v663_v41  ;;  %v840_v3 = vld [vmem:[#allocation2 + $0x41] sm:$0xff] }
 0x1fd   : > { %v839_v46 = vld [vmem:[#allocation2 + $0x31] sm:$0xff]  ;;  %645 = vst.msk [vmem:[#allocation2 + $0x71] sm:$0xff] %vm610_vm11, %v602_v38  ;;  %v773_v49 = vadd.f32 %v765_v40, %v745_v39  ;;  %v711_v58 = vmul.f32 %v866_v24, %v1505_v63  ;;  %v739_v59 = vmul.f32 %v811_v45, %v1512_v12  ;;  %v823_v61 = vmul.f32 %v1514_v14, %v811_v45  ;;  %v868_v4 = vld [vmem:[#allocation2 + $0x42] sm:$0xff]  ;;  %v1562_v24 = vld [vmem:[%s1668_s6] ss:$0 sm:$0xff] }
 0x1fe   : > { %v718_v55 = vadd.f32 %v710_v43, %v690_v42  ;;  %v867_v56 = vld [vmem:[#allocation2 + $0x32] sm:$0xff]  ;;  %v851_v62 = vmul.f32 %v1521_v18, %v839_v46  ;;  %v824_v0 = vmul.f32 %v1514_v14, %v812_v48  ;;  %v664_v5 = vmul.f32 %v811_v45, %v1499_v52 }
 0x1ff   : > { %v801_v60 = vadd.f32 %v793_v50, %v773_v49  ;;  %v719_v2 = vadd.f32 %v711_v58, %v691_v57  ;;  %v684_v6 = vmul.f32 %v839_v46, %v1501_v53  ;;  %v879_v8 = vmul.f32 %v1519_v17, %v867_v56 }
 0x200   : > { %v746_v1 = vadd.f32 %v738_v44, %v718_v55  ;;  %v767_v9 = vmul.f32 %v839_v46, %v1523_v21  ;;  %v795_v10 = vmul.f32 %v867_v56, %v1528_v30  ;;  %v712_v16 = vmul.f32 %v867_v56, %v1505_v63  ;;  %v813_v28 = vld [vmem:[#allocation2 + $0x50] sm:$0xff] }
 0x201   : > { %v830_v7 = vadd.f32 %v822_v31, %v801_v60  ;;  %v747_v13 = vadd.f32 %v739_v59, %v719_v2  ;;  %v692_v15 = vadd.f32 %v684_v6, %v664_v5  ;;  %v852_v20 = vmul.f32 %v1521_v18, %v840_v3  ;;  %v869_v40 = vld [vmem:[#allocation2 + $0x52] sm:$0xff] }
 0x202   : > { %v774_v11 = vadd.f32 %v766_v51, %v746_v1  ;;  %v880_v22 = vmul.f32 %v1519_v17, %v868_v4  ;;  %v740_v23 = vmul.f32 %v812_v48, %v1512_v12  ;;  %v665_v29 = vmul.f32 %v812_v48, %v1499_v52  ;;  %v841_v42 = vld [vmem:[#allocation2 + $0x51] sm:$0xff] }
 0x203   : > { %v858_v19 = vadd.f32 %v850_v35, %v830_v7  ;;  %v775_v26 = vadd.f32 %v767_v9, %v747_v13  ;;  %v720_v27 = vadd.f32 %v712_v16, %v692_v15  ;;  %v768_v32 = vmul.f32 %v840_v3, %v1523_v21 }
 0x204   : > { %v802_v25 = vadd.f32 %v794_v54, %v774_v11  ;;  %v796_v33 = vmul.f32 %v868_v4, %v1528_v30  ;;  %v685_v34 = vmul.f32 %v840_v3, %v1501_v53  ;;  %v825_v39 = vmul.f32 %v1514_v14, %v813_v28  ;;  %v814_v3 = vld [vmem:[#allocation2 + $0x60] sm:$0xff] }
 0x205   : > { %v886_v31 = vadd.f32 %v878_v36, %v858_v19  ;;  %v803_v37 = vadd.f32 %v795_v10, %v775_v26  ;;  %v748_v38 = vadd.f32 %v740_v23, %v720_v27  ;;  %v713_v44 = vmul.f32 %v868_v4, %v1505_v63  ;;  %v842_v11 = vld [vmem:[#allocation2 + $0x61] sm:$0xff] }
 0x206   : > { %v831_v35 = vadd.f32 %v823_v61, %v802_v25  ;;  %v693_v43 = vadd.f32 %v685_v34, %v665_v29  ;;  %v741_v36 = vmul.f32 %v813_v28, %v1512_v12  ;;  %v769_v48 = vmul.f32 %v841_v42, %v1523_v21  ;;  %v870_v19 = vld [vmem:[#allocation2 + $0x62] sm:$0xff]  ;;  %v815_v29 = vld [vmem:[#allocation2 + $0x70] sm:$0xff] }
 0x207   : > { %v901_v41 = vadd.f32 %v1562_v24, %v886_v31  ;;  %v832_v46 = vadd.f32 %v824_v0, %v803_v37  ;;  %v776_v47 = vadd.f32 %v768_v32, %v748_v38  ;;  %v797_v51 = vmul.f32 %v869_v40, %v1528_v30 }
 0x208   : > { %v859_v45 = vadd.f32 %v851_v62, %v831_v35  ;;  %v721_v50 = vadd.f32 %v713_v44, %v693_v43  ;;  %v666_v57 = vmul.f32 %v813_v28, %v1499_v52  ;;  %v686_v60 = vmul.f32 %v841_v42, %v1501_v53  ;;  %v843_v43 = vld [vmem:[#allocation2 + $0x71] sm:$0xff] }
 0x209   : > { %vm909_vm14 = vcmp.ge.f32.partialorder %v901_v41, 0.0  ;;  %v917_v49 = vmul.f32 0.01, %v901_v41  ;;  %v860_v55 = vadd.f32 %v852_v20, %v832_v46  ;;  %v804_v56 = vadd.f32 %v796_v33, %v776_v47  ;;  %v871_v44 = vld [vmem:[#allocation2 + $0x72] sm:$0xff] }
 0x20a   : > { %v887_v54 = vadd.f32 %v879_v8, %v859_v45  ;;  %v749_v59 = vadd.f32 %v741_v36, %v721_v50  ;;  %v714_v61 = vmul.f32 %v869_v40, %v1505_v63  ;;  %v853_v2 = vmul.f32 %v1521_v18, %v841_v42 }
 0x20b   : > { %v925_v58 = vsel %vm909_vm14, %v901_v41, %v917_v49  ;;  %v888_v0 = vadd.f32 %v880_v22, %v860_v55  ;;  %v833_v1 = vadd.f32 %v825_v39, %v804_v56  ;;  %v881_v4 = vmul.f32 %v1519_v17, %v869_v40  ;;  %v816_v49 = vld [vmem:[#allocation2 + $0x80] sm:$0xff] }
 0x20c   : > { %933 = vxpose.xlu0.b32.start [1/8] (short) (narrow) %v925_v58, 8  ;;  %v902_v62 = vadd.f32 %v1562_v24, %v887_v54  ;;  %v777_v5 = vadd.f32 %v769_v48, %v749_v59  ;;  %v694_v6 = vadd.f32 %v686_v60, %v666_v57  ;;  %v742_v7 = vmul.f32 %v814_v3, %v1512_v12 }
 0x20d   : > { %v903_v9 = vadd.f32 %v1562_v24, %v888_v0  ;;  %v861_v10 = vadd.f32 %v853_v2, %v833_v1  ;;  %v826_v15 = vmul.f32 %v1514_v14, %v814_v3  ;;  %v854_v16 = vmul.f32 %v1521_v18, %v842_v11  ;;  %v844_v0 = vld [vmem:[#allocation2 + $0x81] sm:$0xff] }
 0x20e   : > { %vm910_vm15 = vcmp.ge.f32.partialorder %v902_v62, 0.0  ;;  %v918_v8 = vmul.f32 0.01, %v902_v62  ;;  %v805_v13 = vadd.f32 %v797_v51, %v777_v5  ;;  %v722_v20 = vadd.f32 %v714_v61, %v694_v6  ;;  %v872_v6 = vld [vmem:[#allocation2 + $0x82] sm:$0xff] }
 0x20f   : > { %v919_v23 = vmul.f32 0.01, %v903_v9  ;;  %v889_v25 = vadd.f32 %v881_v4, %v861_v10  ;;  %v770_v26 = vmul.f32 %v842_v11, %v1523_v21  ;;  %vm911_vm0 = vcmp.ge.f32.partialorder %v903_v9, 0.0 }
 0x210   : > { %v926_v22 = vsel %vm910_vm15, %v902_v62, %v918_v8  ;;  %v834_v27 = vadd.f32 %v826_v15, %v805_v13  ;;  %v750_v28 = vadd.f32 %v742_v7, %v722_v20  ;;  %v667_v31 = vmul.f32 %v814_v3, %v1499_v52 }
 0x211   : > { %934 = vxpose.xlu0.b32.cont [2/8] (short) (narrow) %v926_v22, 8  ;;  %v904_v32 = vadd.f32 %v1562_v24, %v889_v25  ;;  %v882_v33 = vmul.f32 %v1519_v17, %v870_v19  ;;  %v687_v34 = vmul.f32 %v842_v11, %v1501_v53  ;;  %v715_v35 = vmul.f32 %v870_v19, %v1505_v63  ;;  %v817_v11 = vld [vmem:[#allocation2 + $0x90] sm:$0xff] }
 0x212   : > { %v862_v37 = vadd.f32 %v854_v16, %v834_v27  ;;  %v778_v38 = vadd.f32 %v770_v26, %v750_v28  ;;  %v798_v39 = vmul.f32 %v870_v19, %v1528_v30  ;;  %v827_v40 = vmul.f32 %v1514_v14, %v815_v29  ;;  %v845_v19 = vld [vmem:[#allocation2 + $0x91] sm:$0xff] }
 0x213   : > { %v927_v41 = vsel %vm911_vm0, %v903_v9, %v919_v23  ;;  %v920_v42 = vmul.f32 0.01, %v904_v32  ;;  %v695_v36 = vadd.f32 %v687_v34, %v667_v31  ;;  %v743_v45 = vmul.f32 %v815_v29, %v1512_v12  ;;  %v873_v26 = vld [vmem:[#allocation2 + $0x92] sm:$0xff] }
 0x214   : > { %vm912_vm1 = vcmp.ge.f32.partialorder %v904_v32, 0.0  ;;  %v890_v46 = vadd.f32 %v882_v33, %v862_v37  ;;  %v806_v47 = vadd.f32 %v798_v39, %v778_v38  ;;  %v855_v48 = vmul.f32 %v1521_v18, %v843_v43 }
 0x215   : > { %935 = vxpose.xlu0.b32.cont [3/8] (short) (narrow) %v927_v41, 8  ;;  %v883_v50 = vmul.f32 %v1519_v17, %v871_v44  ;;  %v723_v51 = vadd.f32 %v715_v35, %v695_v36  ;;  %v771_v54 = vmul.f32 %v843_v43, %v1523_v21  ;;  %v668_v55 = vmul.f32 %v815_v29, %v1499_v52 }
 0x216   : > { %v905_v56 = vadd.f32 %v1562_v24, %v890_v46  ;;  %v835_v57 = vadd.f32 %v827_v40, %v806_v47  ;;  %v688_v58 = vmul.f32 %v843_v43, %v1501_v53  ;;  %v716_v59 = vmul.f32 %v871_v44, %v1505_v63 }
 0x217   : > { %v928_v60 = vsel %vm912_vm1, %v904_v32, %v920_v42  ;;  %v751_v61 = vadd.f32 %v743_v45, %v723_v51  ;;  %v799_v62 = vmul.f32 %v871_v44, %v1528_v30  ;;  %v744_v1 = vmul.f32 %v816_v49, %v1512_v12 }
 0x218   : > { %vm913_vm2 = vcmp.ge.f32.partialorder %v905_v56, 0.0  ;;  %v921_v2 = vmul.f32 0.01, %v905_v56  ;;  %v863_v3 = vadd.f32 %v855_v48, %v835_v57  ;;  %v696_v4 = vadd.f32 %v688_v58, %v668_v55 }
 0x219   : > { %936 = vxpose.xlu0.b32.cont [4/8] (short) (narrow) %v928_v60, 8  ;;  %v779_v52 = vadd.f32 %v771_v54, %v751_v61  ;;  %v828_v5 = vmul.f32 %v1514_v14, %v816_v49  ;;  %v772_v63 = vmul.f32 %v844_v0, %v1523_v21  ;;  %v856_v10 = vmul.f32 %v1521_v18, %v844_v0 }
 0x21a   : > { %v891_v7 = vadd.f32 %v883_v50, %v863_v3  ;;  %v724_v53 = vadd.f32 %v716_v59, %v696_v4  ;;  %v929_v8 = vsel %vm913_vm2, %v905_v56, %v921_v2  ;;  %v800_v15 = vmul.f32 %v872_v6, %v1528_v30 }
 0x21b   : > { %v807_v9 = vadd.f32 %v799_v62, %v779_v52  ;;  %v829_v23 = vmul.f32 %v1514_v14, %v817_v11  ;;  %v884_v21 = vmul.f32 %v1519_v17, %v872_v6  ;;  %v857_v29 = vmul.f32 %v1521_v18, %v845_v19 }
 0x21c   : > { %v906_v12 = vadd.f32 %v1562_v24, %v891_v7  ;;  %v752_v13 = vadd.f32 %v744_v1, %v724_v53  ;;  %v885_v32 = vmul.f32 %v1519_v17, %v873_v26 }
 0x21d   : > { %937 = vxpose.xlu0.b32.cont [5/8] (short) (narrow) %v929_v8, 8  ;;  %v836_v16 = vadd.f32 %v828_v5, %v807_v9 }
 0x21e   : > { %vm914_vm3 = vcmp.ge.f32.partialorder %v906_v12, 0.0  ;;  %v922_v20 = vmul.f32 0.01, %v906_v12  ;;  %v780_v22 = vadd.f32 %v772_v63, %v752_v13 }
 0x21f   : > { %v864_v25 = vadd.f32 %v856_v10, %v836_v16 }
 0x220   : > { %v930_v27 = vsel %vm914_vm3, %v906_v12, %v922_v20  ;;  %v808_v28 = vadd.f32 %v800_v15, %v780_v22 }
 0x221   : > { %938 = vxpose.xlu0.b32.cont [6/8] (short) (narrow) %v930_v27, 8  ;;  %v892_v31 = vadd.f32 %v884_v21, %v864_v25 }
 0x222   : > { %v837_v30 = vadd.f32 %v829_v23, %v808_v28 }
 0x223   : > { %v907_v33 = vadd.f32 %v1562_v24, %v892_v31 }
 0x224   : > { %v865_v34 = vadd.f32 %v857_v29, %v837_v30 }
 0x225   : > { %vm915_vm4 = vcmp.ge.f32.partialorder %v907_v33, 0.0  ;;  %v923_v14 = vmul.f32 0.01, %v907_v33 }
 0x226   : > { %v893_v35 = vadd.f32 %v885_v32, %v865_v34 }
 0x227   : > { %v931_v37 = vsel %vm915_vm4, %v907_v33, %v923_v14 }
 0x228   : > { %939 = vxpose.xlu0.b32.cont [7/8] (short) (narrow) %v931_v37, 8  ;;  %v908_v38 = vadd.f32 %v1562_v24, %v893_v35 }
 0x22a   : > { %vm916_vm5 = vcmp.ge.f32.partialorder %v908_v38, 0.0  ;;  %v924_v18 = vmul.f32 0.01, %v908_v38 }
 0x22c   : > { %v932_v39 = vsel %vm916_vm5, %v908_v38, %v924_v18 }
 0x22d   : > { %940 = vxpose.xlu0.b32.end [8/8] (short) (narrow) %v932_v39, 8 }
 0x291   : > { %v949_v17 = vpop.trf.xlu0 }
 0x292   : > { %966 = vst.msk [vmem:[%s296_s19] sm:$0xff] %vm965_vm6, %v949_v17 }
 0x293   : > { %1231 = shalt.err (!%p1228_p2)
}
 0x294   : > { %s1232_s16 = scalar_lea.hbm %s1618_s11, 128  ;;  %s1236_s29 = scalar_lea.hbm %s1669_s7, 256 }
 0x295   : > { %p1233_p4 = scmp.ne.s32.totalorder %s1618_s11, %s1232_s16  ;;  %p1237_p9 = scmp.lt.u32.totalorder %s1618_s11, %s1669_s7 }
 0x296   : > { %p1238_p1 = scmp.lt.u32.totalorder %s1236_s29, %s1232_s16  ;;  %p1240_p6 = scmp.lt.u32.totalorder %s1232_s16, %s1618_s11 }
 0x297   : > { %p1234_p5 = pnand %p1233_p4, %p1676_p11 }
 0x298   : > { %p1239_p3 = por %p1238_p1, %p1237_p9 }
 0x299   : > { %p1235_p7 = pneg %p1234_p5 }
 0x29a   : > { %p1241_p12 = por %p1240_p6, %p1239_p3 }
 0x29c   : > { %p1242_p13 = pnand %p1241_p12, %p1235_p7 }
 0x29e   : > { %1245 = shalt.err (!%p1242_p13)
}
 0x29f   : > { %1141 = dma.vmem_to_hbm [thread:$0]  (%p1676_p11), %s1620_s21, 128, %s1618_s11, %s968_s17  }
 0x2a0 PF: > { %s993_s9 = sand.u32 1, %s1272_s24   ;;  %p1677_p8 = scmp.ne.s32.totalorder %s1674_s14, 0 }
 0x2a1   : > { %p1678_p10 = scmp.ge.s32.totalorder %s1284_s27, 2  ;;  %s994_s8 = scalar_lea.sflag [#allocation5], %s993_s9 }
 0x2a3   : > { %p1148_p0 = pnand %p1678_p10, %p1677_p8 }
 0x2a5   : > { %1267 = dma.done.wait (!%p1148_p0), %s994_s8, 128  }
 0x2a6   : > { %1269 = vsyncadd (!%p1148_p0), %s994_s8, 4294967168  ;;  %p20_p2 = scmp.ge.s32.totalorder %s1356_s30, 4   ;;  %s1679_s24 = smov %s1276_s25 }
 0x2a7   : > { %s1680_s25 = smov %s1280_s26  ;;  %s1681_s26 = smov %s1368_s10 }
 0x2a8   : > { %s1682_s27 = smov %s1356_s30  ;;  %22 = sbr.rel (!%p20_p2) target bundleno = 5 (0x5), region = 96 }
 0x2af   :  { %999 = vsyncpa [#allocation4], 1 }
 0x2b0   :  { %1001 = vsyncpa [#allocation4 + $0x1], 1 }
 0x2b1   :  { %1002 = vsyncpa [#allocation5], 1 }
 0x2b2   :  { %1004 = vsyncpa [#allocation5 + $0x1], 1 }

</bundles_post_ra>
